<compile_context>
chip_gen: v5e
topology: v5e:2x2
jax: 0.10.0
libtpu: 0.0.40
codegen_flags: <defaults>
</compile_context>

<pallas_src>
import functools

import jax
import jax.numpy as jnp
from jax.experimental import pallas as pl
from jax.experimental.pallas import tpu as pltpu


def _activate(y, act):
    if act == "relu":
        return jnp.where(y >= 0, y, 0.2 * y)     # LeakyReLU(negative_slope=0.2)
    return jax.nn.sigmoid(y)                     # exp/recip on the idle EUP slot


def _up_block_kernel(x_ref, wt_ref, b_ref, o_ref, *, act, use_mxu):
    # x_ref: (NB, C_in, TP)   wt_ref: (C_out, C_in)   b_ref: (C_out, 1)
    # o_ref: (NB, C_out, TP)
    nb, c_in, tp = x_ref.shape
    c_out = o_ref.shape[1]
    b = b_ref[...].astype(jnp.float32)

    if use_mxu:
        # Mid/large channel counts: feed the MXU in the native input dtype
        # (no f32 upcast of x), accumulate in f32.
        wt = wt_ref[...].astype(x_ref.dtype)
        for n in range(nb):                      # static unroll; nb small here
            y = jnp.dot(wt, x_ref[n], preferred_element_type=jnp.float32) + b
            o_ref[n] = _activate(y, act).astype(o_ref.dtype)
    else:
        # Truly tiny channel counts (e.g. 4 -> 8): keep the MXU out of the
        # path; C_in unrolled broadcast multiply-accumulates on the VPU
        # (plenty of VALU slack in this HBM-bound kernel).  Compute in f32
        # since v5e has no bf16 VALU/EUP.
        x = x_ref[...].astype(jnp.float32)
        wt = wt_ref[...].astype(jnp.float32)
        y = jnp.broadcast_to(b[None, :, :], (nb, c_out, tp))
        for ci in range(c_in):
            y = y + wt[None, :, ci:ci + 1] * x[:, ci:ci + 1, :]
        o_ref[...] = _activate(y, act).astype(o_ref.dtype)


def _choose_tiling(n, hw, c_in, c_out, itemsize, vmem_budget_bytes, lane=128):
    """Pick (NB images per step, TP pixels per step).

    Budget model (double-buffered in+out blocks):
        2 * NB * TP * (C_in + C_out) * itemsize <= vmem_budget_bytes
    Prefers whole-HW tiles (lane-dense, unmasked stores) and packs several
    batch images per step when H*W is small, so each grid step moves large
    contiguous chunks and the ~0.35us/step overhead is amortized.
    """
    denom = 2 * (c_in + c_out) * itemsize
    max_pixels = max(lane, vmem_budget_bytes // denom)

    if hw <= max_pixels:
        tp = hw                                   # whole pixel axis per image
        nb_cap = max(1, max_pixels // hw)
        if n >= 2:
            # Keep >= 2 balanced grid steps so v7x's two TensorCores both get
            # a shard under dimension_semantics=("parallel", ...).
            nb_cap = min(nb_cap, max(1, n // 2))
        nb = 1
        for d in range(min(nb_cap, n), 0, -1):    # largest divisor of n
            if n % d == 0:
                nb = d
                break
        return nb, tp

    # Large H*W: one image per step, lane-dense pixel tile (multiple of 128).
    tp_cap = max(lane, (max_pixels // lane) * lane)
    tp = 0
    cand = tp_cap
    while cand >= lane:
        if hw % cand == 0:                        # dividing tile: no ragged tail
            tp = cand
            break
        cand -= lane
    if tp == 0:
        # No dividing tile exists: rely on Pallas' bounds-clipped last block
        # instead of a jnp.pad + slice round trip through HBM.
        tp = tp_cap
    return 1, tp


def up_block_forward(x_nchw, weight, bias, *, act="relu",
                     vmem_budget_bytes=24 * 1024 * 1024):
    """x_nchw: (N, C_in, H, W).
    weight:  (C_in, C_out)  (ConvTranspose2d weight[:, :, 0, 0]).
    bias:    (C_out,).
    Returns (N, C_out, H, W), same dtype as x, matching up_block.forward."""
    assert act in ("relu", "sigmoid")
    N, C_in, H, W = x_nchw.shape
    C_out = weight.shape[1]
    HW = H * W
    itemsize = jnp.dtype(x_nchw.dtype).itemsize

    # NCHW stays put: (N, C_in, H, W) -> (N, C_in, H*W) is a free view; pixels
    # land on the lane axis, channels on sublanes.
    x3d = x_nchw.reshape(N, C_in, HW)
    wt = jnp.transpose(weight)        # (C_out, C_in): tiny, one-off
    b2d = bias.reshape(C_out, 1)

    nb, tp = _choose_tiling(N, HW, C_in, C_out, itemsize, vmem_budget_bytes)
    grid = (pl.cdiv(N, nb), pl.cdiv(HW, tp))

    # VPU broadcast-MAC only for truly tiny contraction dims; otherwise MXU.
    use_mxu = C_in >= 16
    kernel = functools.partial(_up_block_kernel, act=act, use_mxu=use_mxu)

    # Footprint-derived scoped-VMEM limit (stays well inside v7x's 64 MiB).
    footprint = 2 * nb * tp * (C_in + C_out) * itemsize
    vmem_limit = int(max(16 << 20, min(footprint + (8 << 20), 128 << 20)))

    out3d = pl.pallas_call(
        kernel,
        out_shape=jax.ShapeDtypeStruct((N, C_out, HW), x_nchw.dtype),
        grid_spec=pltpu.PrefetchScalarGridSpec(
            num_scalar_prefetch=0,
            grid=grid,
            in_specs=[
                pl.BlockSpec((nb, C_in, tp), lambda n, p: (n, 0, p)),
                # Constant index maps: the pipeliner does not re-DMA these
                # tiny operands across grid steps.
                pl.BlockSpec((C_out, C_in), lambda n, p: (0, 0)),
                pl.BlockSpec((C_out, 1), lambda n, p: (0, 0)),
            ],
            out_specs=pl.BlockSpec((nb, C_out, tp), lambda n, p: (n, 0, p)),
        ),
        compiler_params=pltpu.CompilerParams(
            dimension_semantics=("parallel", "parallel"),
            vmem_limit_bytes=vmem_limit,
        ),
    )(x3d, wt, b2d)

    return out3d.reshape(N, C_out, H, W)


def reference_forward(x_nchw, weight, bias, *, act="relu"):
    """Plain-JAX reference matching the PyTorch module (full precision)."""
    y = jnp.einsum("nchw,cd->ndhw", x_nchw, weight,
                   precision=jax.lax.Precision.HIGHEST)
    y = y + bias[None, :, None, None]
    if act == "relu":
        return jnp.where(y >= 0, y, 0.2 * y)
    return jax.nn.sigmoid(y)


if __name__ == "__main__":
    base_key = jax.random.PRNGKey(0)

    # (N, C_in, C_out, H, W, act, extra-kwargs)
    cases = [
        (2, 4, 8, 16, 16, "relu", {}),
        (2, 4, 8, 16, 16, "sigmoid", {}),
        # Forces a small pixel budget -> TP=128 over HW=400: exercises the
        # bounds-clipped ragged last block (no pad/slice fallback).
        (2, 4, 8, 20, 20, "relu", {"vmem_budget_bytes": 19200}),
        # Mid-size channels -> MXU path.
        (2, 32, 32, 8, 8, "sigmoid", {}),
    ]

    ok = True
    for idx, (n, c_in, c_out, h, w, act, kwargs) in enumerate(cases):
        kx, kw, kb = jax.random.split(jax.random.fold_in(base_key, idx), 3)
        x = jax.random.normal(kx, (n, c_in, h, w), dtype=jnp.float32)
        # ConvTranspose2d weight is (C_in, C_out, 1, 1); keep the 2D slice.
        weight = jax.random.normal(kw, (c_in, c_out), dtype=jnp.float32) * 0.1
        bias = jax.random.normal(kb, (c_out,), dtype=jnp.float32) * 0.1

        out = jax.block_until_ready(
            up_block_forward(x, weight, bias, act=act, **kwargs))
        ref = reference_forward(x, weight, bias, act=act)

        if out.shape != ref.shape:
            ok = False
        if not bool(jnp.allclose(out, ref, atol=1e-4, rtol=1e-4)):
            ok = False

    print("KERNEL_OK" if ok else "KERNEL_MISMATCH")
</pallas_src>

<mosaic_0001>
module attributes {stable_mosaic.version = 11 : i64} {
  func.func @_up_block_kernel(%arg0: i32, %arg1: i32, %arg2: memref<1x4x256xf32, #tpu.memory_space<vmem>>, %arg3: memref<8x4xf32, #tpu.memory_space<vmem>>, %arg4: memref<8x1xf32, #tpu.memory_space<vmem>>, %arg5: memref<1x8x256xf32, #tpu.memory_space<vmem>>) attributes {dimension_semantics = [#tpu.dimension_semantics<parallel>, #tpu.dimension_semantics<parallel>], iteration_bounds = array<i64: 2, 1>, scalar_prefetch = 0 : i64, scratch_operands = 0 : i64, tpu.core_type = #tpu.core_type<tc>, window_params = [{transform_indices = @transform_0, window_bounds = array<i64: 1, 4, 256>}, {pipeline_mode = #tpu.pipeline_mode<synchronous>, transform_indices = @transform_1, window_bounds = array<i64: 8, 4>}, {pipeline_mode = #tpu.pipeline_mode<synchronous>, transform_indices = @transform_2, window_bounds = array<i64: 8, 1>}, {transform_indices = @transform_3, window_bounds = array<i64: 1, 8, 256>}]} {
    %c0 = arith.constant 0 : index
    %c0_0 = arith.constant 0 : index
    %0 = vector.load %arg4[%c0, %c0_0] : memref<8x1xf32, #tpu.memory_space<vmem>>, vector<8x1xf32>
    %c0_1 = arith.constant 0 : index
    %c0_2 = arith.constant 0 : index
    %c0_3 = arith.constant 0 : index
    %1 = vector.load %arg2[%c0_1, %c0_2, %c0_3] : memref<1x4x256xf32, #tpu.memory_space<vmem>>, vector<1x4x256xf32>
    %c0_4 = arith.constant 0 : index
    %c0_5 = arith.constant 0 : index
    %2 = vector.load %arg3[%c0_4, %c0_5] : memref<8x4xf32, #tpu.memory_space<vmem>>, vector<8x4xf32>
    %3 = vector.shape_cast %0 : vector<8x1xf32> to vector<1x8x1xf32>
    %4 = vector.shape_cast %3 : vector<1x8x1xf32> to vector<1x8x1xf32>
    %5 = vector.broadcast %4 : vector<1x8x1xf32> to vector<1x8x256xf32>
    %6 = vector.extract_strided_slice %2 {offsets = [0, 0], sizes = [8, 1], strides = [1, 1]} : vector<8x4xf32> to vector<8x1xf32>
    %7 = vector.shape_cast %6 : vector<8x1xf32> to vector<1x8x1xf32>
    %8 = vector.extract_strided_slice %1 {offsets = [0, 0, 0], sizes = [1, 1, 256], strides = [1, 1, 1]} : vector<1x4x256xf32> to vector<1x1x256xf32>
    %9 = vector.broadcast %7 : vector<1x8x1xf32> to vector<1x8x256xf32>
    %10 = vector.broadcast %8 : vector<1x1x256xf32> to vector<1x8x256xf32>
    %11 = arith.mulf %9, %10 : vector<1x8x256xf32>
    %12 = arith.addf %5, %11 : vector<1x8x256xf32>
    %13 = vector.extract_strided_slice %2 {offsets = [0, 1], sizes = [8, 1], strides = [1, 1]} : vector<8x4xf32> to vector<8x1xf32>
    %14 = vector.shape_cast %13 : vector<8x1xf32> to vector<1x8x1xf32>
    %15 = vector.extract_strided_slice %1 {offsets = [0, 1, 0], sizes = [1, 1, 256], strides = [1, 1, 1]} : vector<1x4x256xf32> to vector<1x1x256xf32>
    %16 = vector.broadcast %14 : vector<1x8x1xf32> to vector<1x8x256xf32>
    %17 = vector.broadcast %15 : vector<1x1x256xf32> to vector<1x8x256xf32>
    %18 = arith.mulf %16, %17 : vector<1x8x256xf32>
    %19 = arith.addf %12, %18 : vector<1x8x256xf32>
    %20 = vector.extract_strided_slice %2 {offsets = [0, 2], sizes = [8, 1], strides = [1, 1]} : vector<8x4xf32> to vector<8x1xf32>
    %21 = vector.shape_cast %20 : vector<8x1xf32> to vector<1x8x1xf32>
    %22 = vector.extract_strided_slice %1 {offsets = [0, 2, 0], sizes = [1, 1, 256], strides = [1, 1, 1]} : vector<1x4x256xf32> to vector<1x1x256xf32>
    %23 = vector.broadcast %21 : vector<1x8x1xf32> to vector<1x8x256xf32>
    %24 = vector.broadcast %22 : vector<1x1x256xf32> to vector<1x8x256xf32>
    %25 = arith.mulf %23, %24 : vector<1x8x256xf32>
    %26 = arith.addf %19, %25 : vector<1x8x256xf32>
    %27 = vector.extract_strided_slice %2 {offsets = [0, 3], sizes = [8, 1], strides = [1, 1]} : vector<8x4xf32> to vector<8x1xf32>
    %28 = vector.shape_cast %27 : vector<8x1xf32> to vector<1x8x1xf32>
    %29 = vector.extract_strided_slice %1 {offsets = [0, 3, 0], sizes = [1, 1, 256], strides = [1, 1, 1]} : vector<1x4x256xf32> to vector<1x1x256xf32>
    %30 = vector.broadcast %28 : vector<1x8x1xf32> to vector<1x8x256xf32>
    %31 = vector.broadcast %29 : vector<1x1x256xf32> to vector<1x8x256xf32>
    %32 = arith.mulf %30, %31 : vector<1x8x256xf32>
    %33 = arith.addf %26, %32 : vector<1x8x256xf32>
    %cst = arith.constant 0.000000e+00 : f32
    %34 = vector.broadcast %cst : f32 to vector<1x8x256xf32>
    %35 = arith.cmpf oge, %33, %34 : vector<1x8x256xf32>
    %cst_6 = arith.constant 2.000000e-01 : f32
    %36 = vector.broadcast %cst_6 : f32 to vector<1x8x256xf32>
    %37 = arith.mulf %36, %33 : vector<1x8x256xf32>
    %38 = arith.select %35, %33, %37 : vector<1x8x256xi1>, vector<1x8x256xf32>
    %c0_7 = arith.constant 0 : index
    %c0_8 = arith.constant 0 : index
    %c0_9 = arith.constant 0 : index
    %39 = vector.load %arg5[%c0_7, %c0_8, %c0_9] : memref<1x8x256xf32, #tpu.memory_space<vmem>>, vector<1x8x256xf32>
    tpu.vector_store %arg5[%c0_7, %c0_8, %c0_9], %38 {strides = array<i32>} : memref<1x8x256xf32, #tpu.memory_space<vmem>>, vector<1x8x256xf32>,
    return
  }
  func.func @transform_0(%arg0: i32, %arg1: i32) -> (i32, i32, i32) {
    %c0_i32 = arith.constant 0 : i32
    %c0_i32_0 = arith.constant 0 : i32
    return %arg0, %c0_i32, %arg1 : i32, i32, i32
  }
  func.func @transform_1(%arg0: i32, %arg1: i32) -> (i32, i32) {
    %c0_i32 = arith.constant 0 : i32
    %c0_i32_0 = arith.constant 0 : i32
    %c0_i32_1 = arith.constant 0 : i32
    return %c0_i32, %c0_i32_0 : i32, i32
  }
  func.func @transform_2(%arg0: i32, %arg1: i32) -> (i32, i32) {
    %c0_i32 = arith.constant 0 : i32
    %c0_i32_0 = arith.constant 0 : i32
    %c0_i32_1 = arith.constant 0 : i32
    return %c0_i32, %c0_i32_0 : i32, i32
  }
  func.func @transform_3(%arg0: i32, %arg1: i32) -> (i32, i32, i32) {
    %c0_i32 = arith.constant 0 : i32
    %c0_i32_0 = arith.constant 0 : i32
    return %arg0, %c0_i32, %arg1 : i32, i32, i32
  }
}

</mosaic_0001>

<bundles_post_ra>
// kernel: tpu_custom_call.1
= control target key start
LH: loop header
LB: loop body
LE: loop exit
PB: predicated region body
PF: predicated region fallthrough
CT: control target
= control target key end

     0   :  { %8 = vsyncpa [#allocation3], 0  ;;  %s659_s0 = inlined_call_operand.vmem [shape: f32[2,4,256], index: 0, kind: input, shape index: {}]   ;;  %s660_s1 = inlined_call_operand.vmem [shape: f32[8,4], index: 1, kind: input, shape index: {}]   ;;  %s661_s2 = inlined_call_operand.vmem [shape: f32[8,1], index: 2, kind: input, shape index: {}]   ;;  %s662_s3 = inlined_call_operand.hbm [shape: f32[2,8,256], index: 3, kind: output, shape index: {}]  }
   0x1   :  { %10 = vsyncpa [#allocation3 + $0x1], 0  ;;  %s552_s12 = smov 0   ;;  %s554_s13 = smov 0  }
   0x2   :  { %s556_s14 = smov 0   ;;  %s558_s15 = smov 0  }
   0x3   :  { %s560_s16 = smov 0   ;;  %s562_s17 = smov 0  }
   0x4 LB: > { %s369_s18 = sadd.s32 4294967295, %s526_s17   ;;  %s370_s19 = sadd.s32 4294967294, %s526_s17   ;;  %s526_s17 = sphi %s562_s17, %s16_s17   ;;  %s522_s16 = sphi %s560_s16, %s669_s16   ;;  %s518_s15 = sphi %s558_s15, %s668_s15   ;;  %s514_s14 = sphi %s556_s14, %s667_s14   ;;  %s510_s13 = sphi %s554_s13, %s666_s13   ;;  %s506_s12 = sphi %s552_s12, %s665_s12  }
   0x5   : > { %s28_s20 = sadd.s32 1, %s522_s16  ;;  %s107_s21 = sadd.s32 1, %s514_s14 }
   0x6   : > { %p30_p0 = scmp.ge.s32.totalorder %s28_s20, 2  ;;  %p117_p1 = scmp.ne.s32.totalorder %s514_s14, %s510_s13 }
   0x7   : > { %p118_p2 = scmp.eq.s32.totalorder %s369_s18, 1  ;;  %p123_p3 = scmp.ne.s32.totalorder %s510_s13, %s506_s12 }
   0x8   : > { %s671_s20 = smov (%p30_p0, %s28_s20), 0  ;;  %p124_p5 = scmp.eq.s32.totalorder %s370_s19, 1 }
   0x9   : > { %p592_p4 = por %p118_p2, %p117_p1  ;;  %s102_s23 = ssub.s32 %s522_s16, %s671_s20 }
   0xa   : > { %p373_p6 = scmp.ge.s32.totalorder %s526_s17, 1  ;;  %p105_p7 = scmp.eq.s32.totalorder %s102_s23, 0 }
   0xb   : > { %p599_p8 = por %p124_p5, %p123_p3  ;;  %p161_p9 = scmp.lt.s32.totalorder %s526_s17, 3 }
   0xc   : > { %s605_s25 = scalar_select %p105_p7, %s514_s14, %s107_s21  }
   0xd   : > { %p162_p10 = pnand %p373_p6, %p161_p9 }
   0xe   : > { %p190_p11 = scmp.lt.s32.totalorder (!%p162_p10), %s518_s15, 1  ;;  %s186_s8 = sand.u32 (!%p162_p10), 1, %s510_s13  }
   0xf   : > { %165 = sbr.rel (%p162_p10) target bundleno = 160 (0xa0), region = 32  ;;  %s374_s9 = sshll.u32 (!%p162_p10), %s186_s8, 4 }
  0x10   : > { %s383_s10 = sshll.u32 (!%p162_p10), %s518_s15, 4  ;;  %s188_s21 = scalar_lea.vmem (!%p162_p10), [#allocation2], %s374_s9 }
  0x11   : > { %s288_s19 = scalar_lea.hbm (!%p162_p10), %s662_s3, %s383_s10  ;;  %s290_s23 = sshll.u32 (!%p162_p10), %s188_s21, 4  ;;  %s291_s23 = int_to_ptr.vmem [resolvable:$true] %s290_s23 }
  0x12   : > { %s292_s26 = sshll.u32 (!%p162_p10), %s288_s19, 4  ;;  %s293_s26 = int_to_ptr.hbm [resolvable:$true] %s292_s26 }
  0x13   : > { %s462_s27 = sshra.s32 (!%p162_p10), %s293_s26, 4  ;;  %s463_s27 = int_to_ptr.hbm [resolvable:$true] %s462_s27 }
  0x14   : > { %v202_v0 = vld [vmem:[%s660_s1] sm:$0xff]  ;;  %v528_v1 = vmov 0   ;;  %v529_v2 = vmov 1   ;;  %v530_v3 = vmov 3   ;;  %v531_v5 = vmov 2   ;;  %s191_s30 = scalar_select %p190_p11, %s518_s15, 1 }
  0x15   : > { %443 = vset.pattern.permute.xlu0 %v528_v1  ;;  %444 = vset.pattern.permute.xlu1 %v529_v2  ;;  %v200_v4 = vld [vmem:[%s661_s2] sm:$0xff]  ;;  %s275_s15 = scalar_lea.sflag [#allocation3], %s186_s8  ;;  %s464_s28 = scalar_lea.hbm %s463_s27, 16 }
  0x16   : > { %210 = vperm.xlu0 %443, %v202_v0   ;;  %225 = vperm.xlu1 %444, %v202_v0   ;;  %s382_s4 = sshll.u32 %s191_s30, 3  ;;  %p465_p12 = scmp.ne.s32.totalorder %s463_s27, %s464_s28 }
  0x17   : > { %446 = vset.pattern.permute.xlu2 %v530_v3  ;;  %s197_s7 = scalar_lea.vmem %s659_s0, %s382_s4  ;;  %s468_s4 = scalar_lea.hbm %s662_s3, 32 }
  0x18   : > { %253 = vperm.xlu2 %446, %v202_v0   ;;  %v201_v6 = vld [vmem:[%s197_s7] sm:$0xff]  ;;  %p466_p13 = pnand %p465_p12, %p592_p4  ;;  %p469_p1 = scmp.lt.s32.totalorder %s463_s27, %s662_s3 }
  0x19   : > { %v214_v7 = vperm.slane %v201_v6, 0  ;;  %v215_v8 = vperm.slane %v201_v6, 4  ;;  %v228_v11 = vperm.slane %v201_v6, 1  ;;  %v229_v12 = vperm.slane %v201_v6, 5  ;;  %p470_p2 = scmp.lt.s32.totalorder %s468_s4, %s464_s28 }
  0x1a   : > { %v242_v13 = vperm.slane %v201_v6, 2  ;;  %v243_v14 = vperm.slane %v201_v6, 6  ;;  %v256_v17 = vperm.slane %v201_v6, 3  ;;  %v257_v18 = vperm.slane %v201_v6, 7  ;;  %p467_p0 = pneg %p466_p13 }
  0x1b   : > { %v218_v15 = vperm.slane %v214_v7, 0  ;;  %v219_v16 = vperm.slane %v215_v8, 0  ;;  %v232_v19 = vperm.slane %v228_v11, 1  ;;  %v233_v20 = vperm.slane %v229_v12, 1  ;;  %p471_p3 = por %p470_p2, %p469_p1 }
  0x1c   : > { %v246_v21 = vperm.slane %v242_v13, 2  ;;  %v247_v22 = vperm.slane %v243_v14, 2  ;;  %v260_v25 = vperm.slane %v256_v17, 3  ;;  %v261_v26 = vperm.slane %v257_v18, 3 }
  0x1d   : > { %p472_p5 = pnand %p471_p3, %p467_p0 }
  0x1e   : > { %205 = vperm.xlu0 %443, %v200_v4   ;;  %445 = vset.pattern.permute.xlu1 %v531_v5 }
  0x1f   : > { %239 = vperm.xlu1 %445, %v202_v0  }
  0x26   : > { %447 = vset.pattern.permute.xlu0 %v530_v3 }
  0x72   : > { %v254_v28 = vpop.permute.xlu2 %253 }
  0x73   : > { %v262_v38 = vmul.f32 %v260_v25, %v254_v28  ;;  %v263_v39 = vmul.f32 %v261_v26, %v254_v28 }
  0x88   : > { %v211_v9 = vpop.permute.xlu0 %210  ;;  %v226_v10 = vpop.permute.xlu1 %225 }
  0x89   : > { %v220_v23 = vmul.f32 %v218_v15, %v211_v9  ;;  %v221_v24 = vmul.f32 %v219_v16, %v211_v9  ;;  %v234_v29 = vmul.f32 %v232_v19, %v226_v10  ;;  %v235_v30 = vmul.f32 %v233_v20, %v226_v10 }
  0x90   : > { %v206_v27 = vpop.permute.xlu0 %205 }
  0x91   : > { %v222_v31 = vadd.f32 %v220_v23, %v206_v27  ;;  %v223_v32 = vadd.f32 %v221_v24, %v206_v27  ;;  %v240_v33 = vpop.permute.xlu1 %239 }
  0x92   : > { %v248_v34 = vmul.f32 %v246_v21, %v240_v33  ;;  %v249_v35 = vmul.f32 %v247_v22, %v240_v33 }
  0x93   : > { %v236_v36 = vadd.f32 %v234_v29, %v222_v31  ;;  %v237_v37 = vadd.f32 %v235_v30, %v223_v32 }
  0x95   : > { %v250_v40 = vadd.f32 %v248_v34, %v236_v36  ;;  %v251_v41 = vadd.f32 %v249_v35, %v237_v37 }
  0x97   : > { %v264_v42 = vadd.f32 %v262_v38, %v250_v40  ;;  %v265_v43 = vadd.f32 %v263_v39, %v251_v41 }
  0x99   : > { %vm266_vm0 = vcmp.ge.f32.partialorder %v264_v42, 0.0  ;;  %vm267_vm1 = vcmp.ge.f32.partialorder %v265_v43, 0.0  ;;  %v268_v44 = vmul.f32 0.2, %v264_v42  ;;  %v269_v45 = vmul.f32 0.2, %v265_v43 }
  0x9b   : > { %v270_v46 = vsel %vm266_vm0, %v264_v42, %v268_v44  ;;  %v271_v47 = vsel %vm267_vm1, %v265_v43, %v269_v45 }
  0x9c   : > { %272 = vst [vmem:[%s188_s21] sm:$0xff] %v270_v46 }
  0x9d   : > { %273 = vst [vmem:[%s188_s21 + $0x8] sm:$0xff] %v271_v47 }
  0x9e   : > { %475 = shalt.err (!%p472_p5)
}
  0x9f   : > { %384 = dma.vmem_to_hbm [thread:$0]  (%p592_p4), %s291_s23, 256, %s293_s26, %s275_s15  }
  0xa0 PF: > { %p390_p6 = scmp.ge.s32.totalorder %s526_s17, 2  ;;  %s304_s7 = sand.u32 1, %s506_s12  }
  0xa1   : > { %s305_s8 = scalar_lea.sflag [#allocation3], %s304_s7 }
  0xa2   : > { %p387_p7 = pnand %p390_p6, %p599_p8 }
  0xa4   : > { %p388_p9 = pneg %p387_p7 }
  0xa6   : > { %501 = dma.done.wait (%p388_p9), %s305_s8, 256  }
  0xa7   : > { %503 = vsyncadd (%p388_p9), %s305_s8, 4294967040  ;;  %s16_s17 = sadd.s32 1, %s526_s17   ;;  %s665_s12 = smov %s510_s13 }
  0xa8   : > { %p13_p10 = scmp.ge.s32.totalorder %s16_s17, 4   ;;  %s666_s13 = smov %s514_s14 }
  0xa9   : > { %s667_s14 = smov %s605_s25  ;;  %s668_s15 = smov %s522_s16 }
  0xaa   : > { %s669_s16 = smov %s671_s20  ;;  %15 = sbr.rel (!%p13_p10) target bundleno = 4 (0x4), region = 67 }
  0xaf   :  { %311 = vsyncpa [#allocation3], 1 }
  0xb0   :  { %313 = vsyncpa [#allocation3 + $0x1], 1 }

</bundles_post_ra>
